<compile_context>
chip_gen: v6e
topology: v6e:2x2x1
jax: 0.10.0
libtpu: 0.0.40
codegen_flags: <defaults>
</compile_context>

<pallas_src>
import jax
import jax.numpy as jnp
import numpy as np
from jax import lax
from jax.experimental import pallas as pl
from jax.experimental.pallas import tpu as pltpu

BN_EPS = 1e-3      # norm_cfg eps=0.001
L2_EPS = 1e-12     # F.normalize default eps
TILE_ROWS = 1024   # row-tile cap (mem-bound sweet spot: 512–1024 ≈ 85–86% of HBM roofline)


def _row_tile(total, cap, min_blocks=1):
    """Row tile: <= cap, a multiple of 8 (sublane-legal) unless it spans the whole axis, and
    best-effort >= min_blocks grid steps (keeps both v7x TensorCores busy)."""
    t = min(cap, -(-total // max(min_blocks, 1)))
    if t >= total:
        return total
    t = max(8, (t // 8) * 8)
    return total if t >= total else t


# ----------------------------------------------------------------------------- kernels

def _cluster_kernel(x_ref, wproj_ref, wproto_ref, xnorm_ref, logits_ref):
    """projection_head -> L2 row normalize (single rsqrt) -> prototypes (pre-normalized W)."""
    x = x_ref[...].astype(wproj_ref.dtype)          # f32 HBM tile -> MXU dtype, in-kernel
    xp = jnp.dot(x, wproj_ref[...], preferred_element_type=jnp.float32)
    sumsq = jnp.sum(xp * xp, axis=-1, keepdims=True)
    inv_norm = lax.rsqrt(jnp.maximum(sumsq, L2_EPS * L2_EPS))   # == 1 / max(||x||, eps)
    xn = (xp * inv_norm).astype(xnorm_ref.dtype)    # single rounded value: stored AND used below
    logits = jnp.dot(xn.astype(wproto_ref.dtype), wproto_ref[...],
                     preferred_element_type=jnp.float32)
    xnorm_ref[...] = xn
    logits_ref[...] = logits.astype(logits_ref.dtype)


def _joint_kernel(z_ref, w1_ref, t1_ref, w2_ref, t2_ref, zi_ref, zb_ref):
    """share_linear (Linear->BN1d->ReLU) then patch_neck (Linear->BN1d) for one batch pair.

    z_ref: (2, tp, 2*c0) — the two batches of the pair; each row's lanes hold an
    (even-proposal, odd-proposal) pair.  Lane-concat of the two batches gives a (tp, 4*c0)
    MXU operand; the block-permuted block-diagonal weights place the outputs in column order
    [p_even b0 | p_even b1 | p_odd b0 | p_odd b1], i.e. exactly the torch-reordered row layout
    when the 3-D output is reshaped back to 2-D (pure metadata).  BN scales are pre-folded
    into w1/w2; t1/t2 are the remaining shifts.
    """
    z = jnp.concatenate([z_ref[0], z_ref[1]], axis=-1).astype(w1_ref.dtype)     # (tp, 4*c0)
    h = jnp.dot(z, w1_ref[...], preferred_element_type=jnp.float32)
    h = jnp.maximum(h + t1_ref[...], 0.0)                                       # BN shift + ReLU
    zi = jnp.dot(h.astype(w2_ref.dtype), w2_ref[...], preferred_element_type=jnp.float32)
    zi = zi + t2_ref[...]                                                       # BN shift
    zb_ref[...] = h.astype(zb_ref.dtype)     # (tp, 4*c1) = 256-lane dense store
    zi_ref[...] = zi.astype(zi_ref.dtype)    # (tp, 4*c2) = 128-lane dense store


# ----------------------------------------------------------------------------- wrappers

def cluster_forward(x, w_proj, w_proto, *, tile_rows=TILE_ROWS, use_bf16=True):
    n, d1 = x.shape
    d2 = w_proj.shape[1]
    k = w_proto.shape[1]

    # Prototype row-normalization (torch: normalize(weight, dim=1)); stored transposed -> axis 0.
    # Hoisted out of the kernel (tiny array, once per call).
    wpt = w_proto.astype(jnp.float32)
    wpt = wpt / jnp.maximum(jnp.sqrt(jnp.sum(wpt * wpt, axis=0, keepdims=True)), L2_EPS)

    cdt = jnp.bfloat16 if use_bf16 else jnp.float32   # MXU operand dtype (weights only: tiny)
    odt = jnp.bfloat16 if use_bf16 else jnp.float32   # output dtype (halves writeback traffic)
    wpj = w_proj.astype(cdt)
    wpt = wpt.astype(cdt)

    tr = _row_tile(n, tile_rows, min_blocks=2)        # >= 2 steps keeps both v7x TCs busy
    grid = (pl.cdiv(n, tr),)                          # ragged tail: boundary writes are masked

    xn, logits = pl.pallas_call(
        _cluster_kernel,
        out_shape=(jax.ShapeDtypeStruct((n, d2), odt),   # normalized projection
                   jax.ShapeDtypeStruct((n, k), odt)),   # prototype scores
        grid=grid,
        in_specs=[pl.BlockSpec((tr, d1), lambda i: (i, 0)),
                  pl.BlockSpec((d1, d2), lambda i: (0, 0)),
                  pl.BlockSpec((d2, k), lambda i: (0, 0))],
        out_specs=(pl.BlockSpec((tr, d2), lambda i: (i, 0)),
                   pl.BlockSpec((tr, k), lambda i: (i, 0))),
        compiler_params=pltpu.CompilerParams(dimension_semantics=("parallel",)),
    )(x, wpj, wpt)
    return xn, logits


def _place_blocks(w, n_in, n_out, pairs):
    """Big (n_in*fi, n_out*fo) matrix with copies of w at block positions (src, dst)."""
    fi, fo = w.shape
    big = jnp.zeros((n_in * fi, n_out * fo), w.dtype)
    for s, d in pairs:
        big = big.at[s * fi:(s + 1) * fi, d * fo:(d + 1) * fo].set(w)
    return big


def joint_forward(proposal_features, batch_size, params, *, tile_rows=TILE_ROWS, use_bf16=True):
    """proposal_features: (B * P, C0) = self.attn(...).squeeze() output, in original row order."""
    m, c0 = proposal_features.shape
    assert m % batch_size == 0 and batch_size % 2 == 0
    p = m // batch_size
    assert p % 2 == 0, "proposal count per batch must be even (proposal-pair lane folding)"
    half_p = p // 2
    npairs = batch_size // 2

    # Fold eval-mode BN scales into the bias-free Linear weights; keep only the shifts.
    w1s = params["w_share"].astype(jnp.float32) * params["bn1_scale"].astype(jnp.float32)
    w2s = params["w_patch"].astype(jnp.float32) * params["bn2_scale"].astype(jnp.float32)
    c1, c2 = w1s.shape[1], w2s.shape[1]

    # Input column blocks of z (c0 each): [b0_even, b0_odd, b1_even, b1_odd]
    # Desired output column blocks     : [even_b0, even_b1, odd_b0, odd_b1]
    # -> block-PERMUTED block-diagonal weight; the zero blocks are free (kernel is HBM-bound).
    w1_big = _place_blocks(w1s, 4, 4, [(0, 0), (2, 1), (1, 2), (3, 3)])   # (4c0, 4c1)
    w2_big = _place_blocks(w2s, 4, 4, [(0, 0), (1, 1), (2, 2), (3, 3)])   # (4c1, 4c2)
    t1_big = jnp.tile(params["bn1_shift"].astype(jnp.float32), (1, 4))    # (1, 4c1)
    t2_big = jnp.tile(params["bn2_shift"].astype(jnp.float32), (1, 4))    # (1, 4c2)

    cdt = jnp.bfloat16 if use_bf16 else jnp.float32
    odt = jnp.bfloat16 if use_bf16 else jnp.float32
    w1_big = w1_big.astype(cdt)
    w2_big = w2_big.astype(cdt)

    # Pure-metadata view (no transpose, no copy): (B*P, c0) -> (npairs, 2, P//2, 2*c0).
    pf4 = proposal_features.reshape(npairs, 2, half_p, 2 * c0)

    tp = _row_tile(half_p, tile_rows, min_blocks=2 if npairs < 2 else 1)
    grid = (npairs, pl.cdiv(half_p, tp))

    zi, zb = pl.pallas_call(
        _joint_kernel,
        out_shape=(jax.ShapeDtypeStruct((npairs, half_p, 4 * c2), odt),   # z_instance (128 lanes)
                   jax.ShapeDtypeStruct((npairs, half_p, 4 * c1), odt)),  # z_batch    (256 lanes)
        grid=grid,
        in_specs=[pl.BlockSpec((None, 2, tp, 2 * c0), lambda g, pb: (g, 0, pb, 0)),
                  pl.BlockSpec((4 * c0, 4 * c1), lambda g, pb: (0, 0)),
                  pl.BlockSpec((1, 4 * c1), lambda g, pb: (0, 0)),
                  pl.BlockSpec((4 * c1, 4 * c2), lambda g, pb: (0, 0)),
                  pl.BlockSpec((1, 4 * c2), lambda g, pb: (0, 0))],
        out_specs=(pl.BlockSpec((None, tp, 4 * c2), lambda g, pb: (g, pb, 0)),
                   pl.BlockSpec((None, tp, 4 * c1), lambda g, pb: (g, pb, 0))),
        compiler_params=pltpu.CompilerParams(dimension_semantics=("parallel", "parallel")),
    )(pf4, w1_big, t1_big, w2_big, t2_big)

    # (npairs, P//2, 4*c) is exactly the reordered (M, c) contiguous memory -> metadata reshape.
    z_instance = zi.reshape(m, c2)
    z_batch = zb.reshape(m, c1)
    return z_instance, z_batch


# ----------------------------------------------------------------------------- params

def init_params(key, embed_layer):
    c0, c1, c2 = embed_layer
    ks = jax.random.split(key, 12)

    def lin(k, fan_in, fan_out):   # torch Linear default init, stored transposed
        bound = 1.0 / np.sqrt(fan_in)
        return jax.random.uniform(k, (fan_in, fan_out), jnp.float32, -bound, bound)

    def bn(kg, kb, km, kv, c):     # eval-mode BN folded to scale/shift, shape (1, c)
        gamma = 1.0 + 0.1 * jax.random.normal(kg, (1, c), jnp.float32)
        beta = 0.1 * jax.random.normal(kb, (1, c), jnp.float32)
        mean = 0.1 * jax.random.normal(km, (1, c), jnp.float32)
        var = 1.0 + 0.1 * jax.random.uniform(kv, (1, c), jnp.float32)
        scale = gamma / jnp.sqrt(var + BN_EPS)
        shift = beta - mean * scale
        return scale, shift

    bn1_scale, bn1_shift = bn(ks[4], ks[5], ks[6], ks[7], c1)
    bn2_scale, bn2_shift = bn(ks[8], ks[9], ks[10], ks[11], c2)
    return dict(
        w_share=lin(ks[0], c0, c1),      # share_linear Linear(c0, c1, bias=False)
        w_patch=lin(ks[1], c1, c2),      # patch_neck   Linear(c1, c2, bias=False)
        w_proj=lin(ks[2], c1, c2),       # projection_head Linear(c1, c2, bias=False)
        w_proto=lin(ks[3], c2, 128),     # prototypes Linear(c2, 128, bias=False)
        bn1_scale=bn1_scale, bn1_shift=bn1_shift,
        bn2_scale=bn2_scale, bn2_shift=bn2_shift,
    )


# ----------------------------------------------------------------------------- reference

def _ref_cluster(x, w_proj, w_proto):
    xp = x @ w_proj
    xn = xp / jnp.maximum(jnp.linalg.norm(xp, axis=1, keepdims=True), L2_EPS)
    wpn = w_proto / jnp.maximum(jnp.linalg.norm(w_proto, axis=0, keepdims=True), L2_EPS)
    return xn, xn @ wpn


def _ref_joint(pf, b, params):
    m, c0 = pf.shape
    p = m // b
    z = pf.reshape(b, p, c0).reshape(b // 2, 2, p, c0)
    z_in = jnp.transpose(z, (0, 2, 1, 3)).reshape(-1, c0)
    h = jnp.maximum(z_in @ params["w_share"] * params["bn1_scale"] + params["bn1_shift"], 0.0)
    zi = h @ params["w_patch"] * params["bn2_scale"] + params["bn2_shift"]
    return zi, h


def _f32(a):
    return np.asarray(jnp.asarray(a, jnp.float32))


# ----------------------------------------------------------------------------- main

if __name__ == "__main__":
    embed_layer = (32, 64, 32)          # (attn dim, share_linear out, patch_neck/proj out)
    key = jax.random.PRNGKey(0)
    k_param, k_x, k_pf = jax.random.split(key, 3)
    params = init_params(k_param, embed_layer)

    # 'cluster' branch input: x with feature dim = embed_layer[1]
    x_cluster = jax.random.normal(k_x, (16, embed_layer[1]), jnp.float32)
    # 'joint_instance_class_embed' branch: attn output (B*P, embed_layer[0]); B even, P even.
    B, P = 4, 8
    proposal_features = jax.random.normal(k_pf, (B * P, embed_layer[0]), jnp.float32)

    # pure-JAX references
    xn_r, sc_r = _ref_cluster(x_cluster, params["w_proj"], params["w_proto"])
    zi_r, zb_r = _ref_joint(proposal_features, B, params)

    # Exact f32 path (tight correctness check of the fused structure / reordering).
    xn32, sc32 = cluster_forward(x_cluster, params["w_proj"], params["w_proto"], use_bf16=False)
    zi32, zb32 = joint_forward(proposal_features, B, params, use_bf16=False)
    jax.block_until_ready((xn32, sc32, zi32, zb32))
    np.testing.assert_allclose(_f32(xn32), _f32(xn_r), rtol=1e-4, atol=1e-4)
    np.testing.assert_allclose(_f32(sc32), _f32(sc_r), rtol=1e-4, atol=1e-4)
    np.testing.assert_allclose(_f32(zi32), _f32(zi_r), rtol=1e-4, atol=1e-4)
    np.testing.assert_allclose(_f32(zb32), _f32(zb_r), rtol=1e-4, atol=1e-4)

    # Default fast path: bf16 MXU operands + bf16 outputs, f32 accumulation / epilogue.
    xn, proto_scores = cluster_forward(x_cluster, params["w_proj"], params["w_proto"])
    z_instance, z_batch = joint_forward(proposal_features, B, params)
    jax.block_until_ready((xn, proto_scores, z_instance, z_batch))
    np.testing.assert_allclose(_f32(xn), _f32(xn_r), rtol=5e-2, atol=5e-2)
    np.testing.assert_allclose(_f32(proto_scores), _f32(sc_r), rtol=5e-2, atol=5e-2)
    np.testing.assert_allclose(_f32(z_instance), _f32(zi_r), rtol=5e-2, atol=5e-2)
    np.testing.assert_allclose(_f32(z_batch), _f32(zb_r), rtol=5e-2, atol=5e-2)

    print("KERNEL_OK")
</pallas_src>

<mosaic_0001>
module attributes {stable_mosaic.version = 11 : i64} {
  func.func @_cluster_kernel(%arg0: i32, %arg1: memref<8x64xf32, #tpu.memory_space<vmem>>, %arg2: memref<64x32xf32, #tpu.memory_space<vmem>>, %arg3: memref<32x128xf32, #tpu.memory_space<vmem>>, %arg4: memref<8x32xf32, #tpu.memory_space<vmem>>, %arg5: memref<8x128xf32, #tpu.memory_space<vmem>>) attributes {dimension_semantics = [#tpu.dimension_semantics<parallel>], iteration_bounds = array<i64: 2>, scalar_prefetch = 0 : i64, scratch_operands = 0 : i64, tpu.core_type = #tpu.core_type<tc>, window_params = [{transform_indices = @transform_0, window_bounds = array<i64: 8, 64>}, {pipeline_mode = #tpu.pipeline_mode<synchronous>, transform_indices = @transform_1, window_bounds = array<i64: 64, 32>}, {pipeline_mode = #tpu.pipeline_mode<synchronous>, transform_indices = @transform_2, window_bounds = array<i64: 32, 128>}, {transform_indices = @transform_3, window_bounds = array<i64: 8, 32>}, {transform_indices = @transform_4, window_bounds = array<i64: 8, 128>}]} {
    %c0 = arith.constant 0 : index
    %c0_0 = arith.constant 0 : index
    %0 = vector.load %arg1[%c0, %c0_0] : memref<8x64xf32, #tpu.memory_space<vmem>>, vector<8x64xf32>
    %c0_1 = arith.constant 0 : index
    %c0_2 = arith.constant 0 : index
    %1 = vector.load %arg2[%c0_1, %c0_2] : memref<64x32xf32, #tpu.memory_space<vmem>>, vector<64x32xf32>
    %cst = arith.constant dense<0.000000e+00> : vector<8x32xf32>
    %2 = tpu.matmul %0, %1, %cst {dimension_numbers = #tpu.dot_dimension_numbers<[1], [0], [0], [1], [0, 0, 1, 1], [], []>} : vector<8x64xf32>, vector<64x32xf32>, vector<8x32xf32> -> vector<8x32xf32>
    %3 = arith.mulf %2, %2 : vector<8x32xf32>
    %cst_3 = arith.constant dense<0.000000e+00> : vector<8xf32>
    %4 = vector.multi_reduction <add>, %3, %cst_3 [1] : vector<8x32xf32> to vector<8xf32>
    %5 = vector.shape_cast %4 : vector<8xf32> to vector<8x1xf32>
    %cst_4 = arith.constant 1.000000e-24 : f32
    %6 = vector.broadcast %cst_4 : f32 to vector<8x1xf32>
    %7 = arith.maximumf %5, %6 : vector<8x1xf32>
    %8 = math.rsqrt %7 : vector<8x1xf32>
    %9 = vector.broadcast %8 : vector<8x1xf32> to vector<8x32xf32>
    %10 = arith.mulf %2, %9 : vector<8x32xf32>
    %c0_5 = arith.constant 0 : index
    %c0_6 = arith.constant 0 : index
    %11 = vector.load %arg3[%c0_5, %c0_6] : memref<32x128xf32, #tpu.memory_space<vmem>>, vector<32x128xf32>
    %cst_7 = arith.constant dense<0.000000e+00> : vector<8x128xf32>
    %12 = tpu.matmul %10, %11, %cst_7 {dimension_numbers = #tpu.dot_dimension_numbers<[1], [0], [0], [1], [0, 0, 1, 1], [], []>} : vector<8x32xf32>, vector<32x128xf32>, vector<8x128xf32> -> vector<8x128xf32>
    %c0_8 = arith.constant 0 : index
    %c0_9 = arith.constant 0 : index
    %13 = vector.load %arg4[%c0_8, %c0_9] : memref<8x32xf32, #tpu.memory_space<vmem>>, vector<8x32xf32>
    tpu.vector_store %arg4[%c0_8, %c0_9], %10 {strides = array<i32>} : memref<8x32xf32, #tpu.memory_space<vmem>>, vector<8x32xf32>,
    %c0_10 = arith.constant 0 : index
    %c0_11 = arith.constant 0 : index
    %14 = vector.load %arg5[%c0_10, %c0_11] : memref<8x128xf32, #tpu.memory_space<vmem>>, vector<8x128xf32>
    tpu.vector_store %arg5[%c0_10, %c0_11], %12 {strides = array<i32>} : memref<8x128xf32, #tpu.memory_space<vmem>>, vector<8x128xf32>,
    return
  }
  func.func @transform_0(%arg0: i32) -> (i32, i32) {
    %c0_i32 = arith.constant 0 : i32
    %c0_i32_0 = arith.constant 0 : i32
    return %arg0, %c0_i32 : i32, i32
  }
  func.func @transform_1(%arg0: i32) -> (i32, i32) {
    %c0_i32 = arith.constant 0 : i32
    %c0_i32_0 = arith.constant 0 : i32
    %c0_i32_1 = arith.constant 0 : i32
    return %c0_i32, %c0_i32_0 : i32, i32
  }
  func.func @transform_2(%arg0: i32) -> (i32, i32) {
    %c0_i32 = arith.constant 0 : i32
    %c0_i32_0 = arith.constant 0 : i32
    %c0_i32_1 = arith.constant 0 : i32
    return %c0_i32, %c0_i32_0 : i32, i32
  }
  func.func @transform_3(%arg0: i32) -> (i32, i32) {
    %c0_i32 = arith.constant 0 : i32
    %c0_i32_0 = arith.constant 0 : i32
    return %arg0, %c0_i32 : i32, i32
  }
  func.func @transform_4(%arg0: i32) -> (i32, i32) {
    %c0_i32 = arith.constant 0 : i32
    %c0_i32_0 = arith.constant 0 : i32
    return %arg0, %c0_i32 : i32, i32
  }
}

</mosaic_0001>

<bundles_post_ra>
// kernel: tpu_custom_call.1
= control target key start
LH: loop header
LB: loop body
LE: loop exit
PB: predicated region body
PF: predicated region fallthrough
CT: control target
= control target key end

     0   :  { %10 = vsyncpa [#allocation3], 0  ;;  %s891_s0 = inlined_call_operand.vmem [shape: f32[16,64], index: 0, kind: input, shape index: {}]   ;;  %s892_s1 = inlined_call_operand.vmem [shape: f32[64,32], index: 1, kind: input, shape index: {}]   ;;  %s893_s2 = inlined_call_operand.vmem [shape: f32[32,128], index: 2, kind: input, shape index: {}]   ;;  %s894_s3 = inlined_call_operand.hbm [shape: f32[16,32], index: 3, kind: output, shape index: {0}]   ;;  %s895_s4 = inlined_call_operand.hbm [shape: f32[16,128], index: 4, kind: output, shape index: {1}]  }
   0x1   :  { %12 = vsyncpa [#allocation3 + $0x1], 0 }
   0x2   :  { %13 = vsyncpa [#allocation5], 0 }
   0x3   :  { %15 = vsyncpa [#allocation5 + $0x1], 0  ;;  %s725_s15 = smov 0   ;;  %s727_s16 = smov 0  }
   0x4   :  { %s729_s17 = smov 0   ;;  %s731_s18 = smov 0  }
   0x5 LB: > { %s746_s19 = sadd.s32 4294967295, %s694_s18   ;;  %s497_s20 = sadd.s32 4294967294, %s694_s18   ;;  %s694_s18 = sphi %s731_s18, %s901_s18   ;;  %s690_s17 = sphi %s729_s17, %s900_s17   ;;  %s686_s16 = sphi %s727_s16, %s899_s16   ;;  %s682_s15 = sphi %s725_s15, %s898_s15  }
   0x6   : > { %s750_s21 = sadd.s32 1, %s694_s18   ;;  %s96_s22 = sadd.s32 1, %s690_s17 }
   0x7   : > { %s93_s23 = ssub.s32 %s694_s18, %s750_s21  ;;  %p106_p0 = scmp.ne.s32.totalorder %s690_s17, %s686_s16 }
   0x8   : > { %p94_p1 = scmp.eq.s32.totalorder %s93_s23, 0  ;;  %p107_p2 = scmp.eq.s32.totalorder %s746_s19, 1 }
   0x9   : > { %p112_p3 = scmp.ne.s32.totalorder %s686_s16, %s682_s15  ;;  %p113_p4 = scmp.eq.s32.totalorder %s497_s20, 1 }
   0xa   : > { %s761_s24 = scalar_select %p94_p1, %s690_s17, %s96_s22  }
   0xb   : > { %p763_p5 = por %p107_p2, %p106_p0  ;;  %p767_p6 = por %p113_p4, %p112_p3 }
   0xc   : > { %p500_p7 = scmp.ge.s32.totalorder %s694_s18, 1  ;;  %p170_p8 = scmp.lt.s32.totalorder %s694_s18, 3 }
   0xe   : > { %p171_p9 = pnand %p500_p7, %p170_p8 }
   0xf   : > { %p200_p10 = scmp.lt.s32.totalorder (!%p171_p9), %s746_s19, 1  ;;  %s816_s13 = sand.u32 (!%p171_p9), 1, %s686_s16  }
  0x10   : > { %174 = sbr.rel (%p171_p9) target bundleno = 597 (0x255), region = 32  ;;  %s501_s14 = sshll.u32 (!%p171_p9), %s816_s13, 3 }
  0x11   : > { %s192_s20 = scalar_lea.vmem (!%p171_p9), [#allocation2], %s501_s14  ;;  %s508_s22 = sshll.u32 (!%p171_p9), %s746_s19, 7 }
  0x12   : > { %s393_s29 = sshll.u32 (!%p171_p9), %s192_s20, 4  ;;  %s375_s30 = scalar_lea.sflag (!%p171_p9), [#allocation3], %s816_s13  ;;  %s394_s29 = int_to_ptr.vmem [resolvable:$true] %s393_s29 }
  0x13   : > { %s604_s5 = scalar_lea.vmem (!%p171_p9), %s394_s29, 128  ;;  %s698_s6 = smov (!%p171_p9), [#allocation2]  }
  0x14   : > { %p605_p11 = scmp.ne.s32.totalorder (!%p171_p9), %s394_s29, %s604_s5 }
  0x15   : > { %v212_v0 = vld [vmem:[%s892_s1 + $0x38] sm:$0xff]  ;;  %v696_v1 = vmov 0.0   ;;  %v211_v2 = vld [vmem:[%s892_s1 + $0x30] sm:$0xff]  ;;  %vm697_vm0 = vmmov 0   ;;  %v210_v3 = vld [vmem:[%s892_s1 + $0x28] sm:$0xff]  ;;  %s201_s7 = scalar_select %p200_p10, %s746_s19, 1 }
  0x16   : > { %526 = vmatprep.subr.mxu0 %v696_v1  ;;  %542 = vmatprep.mubr.msk.f32.mxu0 %vm697_vm0, %v696_v1  ;;  %v209_v4 = vld [vmem:[%s892_s1 + $0x20] sm:$0xff]  ;;  %v208_v5 = vld [vmem:[%s892_s1 + $0x18] sm:$0xff]  ;;  %v207_v6 = vld [vmem:[%s892_s1 + $0x10] sm:$0xff]  ;;  %vm213_vm1 = vcmask 523264   ;;  %vm288_vm2 = vcmask 261120   ;;  %p606_p12 = pnand %p605_p11, %p763_p5 }
  0x17   : > { %527 = vmatpush3.msra.mxu0 %v212_v0  ;;  %545 = vmatprep.subr.mxu1 %v696_v1  ;;  %s503_s12 = sshll.u32 %s201_s7, 3  ;;  %v206_v7 = vld [vmem:[%s892_s1 + $0x8] sm:$0xff]  ;;  %v205_v8 = vld [vmem:[%s892_s1] sm:$0xff]  ;;  %v298_v14 = vld [vmem:[%s893_s2 + $0x18] sm:$0xff]  ;;  %s608_s7 = sshll.u32 %s698_s6, 4  ;;  %s609_s7 = int_to_ptr.vmem [resolvable:$false] %s608_s7 }
  0x18   : > { %528 = vmatprep.subr.mxu0 %v696_v1  ;;  %553 = vmatprep.mubr.msk.f32.mxu1 %vm697_vm0, %v696_v1  ;;  %s203_s28 = scalar_lea.vmem %s891_s0, %s503_s12  ;;  %v297_v15 = vld [vmem:[%s893_s2 + $0x10] sm:$0xff]  ;;  %v296_v16 = vld [vmem:[%s893_s2 + $0x8] sm:$0xff]  ;;  %v295_v17 = vld [vmem:[%s893_s2] sm:$0xff]  ;;  %p607_p13 = pneg %p606_p12 }
  0x19   : > { %529 = vmatpush3.msra.mxu0 %v211_v2  ;;  %v204_v9 = vld [vmem:[%s203_s28] sm:$0xff]  ;;  %546 = vmatpush3.msra.mxu1 %v298_v14  ;;  %s391_s28 = scalar_lea.hbm %s894_s3, %s508_s22  ;;  %s610_s8 = scalar_lea.vmem %s609_s7, 256 }
  0x1a   : > { %530 = vmatprep.subr.mxu0 %v696_v1  ;;  %547 = vmatprep.subr.mxu1 %v696_v1  ;;  %p611_p0 = scmp.lt.s32.totalorder %s394_s29, %s609_s7  ;;  %p612_p1 = scmp.lt.s32.totalorder %s610_s8, %s604_s5 }
  0x1b   : > { %531 = vmatpush3.msra.mxu0 %v210_v3  ;;  %548 = vmatpush3.msra.mxu1 %v297_v15 }
  0x1c   : > { %532 = vmatprep.subr.mxu0 %v696_v1  ;;  %549 = vmatprep.subr.mxu1 %v696_v1  ;;  %p613_p2 = por %p612_p1, %p611_p0 }
  0x1d   : > { %533 = vmatpush3.msra.mxu0 %v209_v4  ;;  %550 = vmatpush3.msra.mxu1 %v296_v16 }
  0x1e   : > { %534 = vmatprep.subr.mxu0 %v696_v1  ;;  %551 = vmatprep.subr.mxu1 %v696_v1  ;;  %p614_p3 = pnand %p613_p2, %p607_p13 }
  0x1f   : > { %535 = vmatpush3.msra.mxu0 %v208_v5  ;;  %552 = vmatpush3.msra.mxu1 %v295_v17 }
  0x20   : > { %536 = vmatprep.subr.mxu0 %v696_v1 }
  0x21   : > { %537 = vmatpush3.msra.mxu0 %v207_v6 }
  0x22   : > { %538 = vmatprep.subr.mxu0 %v696_v1 }
  0x23   : > { %539 = vmatpush3.msra.mxu0 %v206_v7 }
  0x24   : > { %540 = vmatprep.subr.mxu0 %v696_v1 }
  0x25   : > { %541 = vmatpush3.msra.mxu0 %v205_v8 }
  0x26   : > { %543 = vmatmul.mubr.msk.f32.vlgmr.msra.gmra.mxu0 %vm213_vm1, %v204_v9 }
  0xe6   : > { %v283_v10 = vpop.f32.mrf.mxu0 }
  0xe7   : > { %v287_v11 = vmul.f32 %v283_v10, %v283_v10 }
  0xe8   : > { %v544_v12 = vpop.f32.mrf.mxu0 }
  0xe9   : > { %v289_v13 = vsel %vm288_vm2, %v287_v11, 0.0 }
  0xea   : > { %290 = vadd.xlane.f32.xlu0 %v289_v13 }
 0x173   : > { %v291_v18 = vpop.xlane.xlu0 %290 }
 0x174   : > { %v292_v19 = vmax.f32 %v291_v18, 1e-24 }
 0x176   : > { %602 = vrsqrt.f32 %v292_v19 }
 0x183   : > { %v603_v20 = vpop.eup %602 }
 0x184   : > { %v294_v21 = vmul.f32 %v603_v20, %v283_v10 }
 0x186   : > { %554 = vmatmul.mubr.msk.f32.vlgmr.msra.gmra.mxu1 %vm288_vm2, %v294_v21  ;;  %372 = vst.msk [vmem:[%s192_s20] sm:$0xff] %vm288_vm2, %v294_v21 }
 0x187   : > { %617 = shalt.err (!%p614_p3)
}
 0x188   : > { %s618_s9 = scalar_lea.hbm %s391_s28, 128  ;;  %s622_s12 = scalar_lea.hbm %s894_s3, 256 }
 0x189   : > { %p619_p4 = scmp.ne.s32.totalorder %s391_s28, %s618_s9  ;;  %p623_p9 = scmp.lt.s32.totalorder %s391_s28, %s894_s3 }
 0x18a   : > { %p624_p10 = scmp.lt.s32.totalorder %s622_s12, %s618_s9 }
 0x18b   : > { %p620_p7 = pnand %p619_p4, %p763_p5 }
 0x18c   : > { %p625_p11 = por %p624_p10, %p623_p9 }
 0x18d   : > { %p621_p8 = pneg %p620_p7 }
 0x18f   : > { %p626_p12 = pnand %p625_p11, %p621_p8 }
 0x191   : > { %629 = shalt.err (!%p626_p12)
}
 0x192   : > { %556 = dma.vmem_to_hbm [thread:$0]  (%p763_p5), %s394_s29, 128, %s391_s28, %s375_s30  }
 0x193   : > { %s199_s27 = scalar_lea.vmem [#allocation4], %s501_s14  ;;  %s851_s8 = scalar_lea.hbm %s895_s4, %s508_s22 }
 0x194   : > { %s406_s5 = sshll.u32 %s199_s27, 4  ;;  %s380_s9 = scalar_lea.sflag [#allocation5], %s816_s13  ;;  %s844_s5 = int_to_ptr.vmem [resolvable:$true] %s406_s5 }
 0x195   : > { %s630_s10 = scalar_lea.vmem %s844_s5, 128  ;;  %s699_s14 = smov [#allocation4]  }
 0x196   : > { %p631_p13 = scmp.ne.s32.totalorder %s844_s5, %s630_s10  ;;  %s634_s28 = sshll.u32 %s699_s14, 4  ;;  %s635_s28 = int_to_ptr.vmem [resolvable:$false] %s634_s28 }
 0x197   : > { %s636_s19 = scalar_lea.vmem %s635_s28, 256  ;;  %p637_p2 = scmp.lt.s32.totalorder %s844_s5, %s635_s28 }
 0x198   : > { %p632_p0 = pnand %p631_p13, %p763_p5  ;;  %p638_p3 = scmp.lt.s32.totalorder %s636_s19, %s630_s10 }
 0x19a   : > { %p633_p1 = pneg %p632_p0  ;;  %p639_p4 = por %p638_p3, %p637_p2 }
 0x19c   : > { %p640_p7 = pnand %p639_p4, %p633_p1 }
 0x246   : > { %v368_v22 = vpop.f32.mrf.mxu1 }
 0x247   : > { %373 = vst [vmem:[%s199_s27] sm:$0xff] %v368_v22 }
 0x248   : > { %v555_v23 = vpop.f32.mrf.mxu1 }
 0x249   : > { %643 = shalt.err (!%p640_p7)
}
 0x24a   : > { %s644_s22 = scalar_lea.hbm %s851_s8, 128  ;;  %s648_s30 = scalar_lea.hbm %s895_s4, 256 }
 0x24b   : > { %p645_p8 = scmp.ne.s32.totalorder %s851_s8, %s644_s22  ;;  %p649_p11 = scmp.lt.s32.totalorder %s851_s8, %s895_s4 }
 0x24c   : > { %p650_p12 = scmp.lt.s32.totalorder %s648_s30, %s644_s22 }
 0x24d   : > { %p646_p9 = pnand %p645_p8, %p763_p5 }
 0x24e   : > { %p651_p13 = por %p650_p12, %p649_p11 }
 0x24f   : > { %p647_p10 = pneg %p646_p9 }
 0x251   : > { %p652_p0 = pnand %p651_p13, %p647_p10 }
 0x253   : > { %655 = shalt.err (!%p652_p0)
}
 0x254   : > { %557 = dma.vmem_to_hbm [thread:$0]  (%p763_p5), %s844_s5, 128, %s851_s8, %s380_s9  }
 0x255 PF: > { %p567_p1 = scmp.ge.s32.totalorder %s694_s18, 2  ;;  %s418_s20 = sand.u32 1, %s682_s15  }
 0x256   : > { %s419_s23 = scalar_lea.sflag [#allocation3], %s418_s20 }
 0x257   : > { %p561_p2 = pnand %p567_p1, %p767_p6 }
 0x259   : > { %p562_p3 = pneg %p561_p2 }
 0x25b   : > { %673 = dma.done.wait (%p562_p3), %s419_s23, 128  }
 0x25c   : > { %675 = vsyncadd (%p562_p3), %s419_s23, 4294967168  ;;  %s428_s27 = scalar_lea.sflag [#allocation5], %s418_s20 }
 0x25d   : > { %677 = dma.done.wait (%p562_p3), %s428_s27, 128  }
 0x25e   : > { %679 = vsyncadd (%p562_p3), %s428_s27, 4294967168  ;;  %p18_p5 = scmp.ge.s32.totalorder %s750_s21, 4   ;;  %s898_s15 = smov %s686_s16 }
 0x25f   : > { %s899_s16 = smov %s690_s17  ;;  %s900_s17 = smov %s761_s24 }
 0x260   : > { %s901_s18 = smov %s750_s21  ;;  %20 = sbr.rel (!%p18_p5) target bundleno = 5 (0x5), region = 84 }
 0x265   :  { %433 = vsyncpa [#allocation3], 1 }
 0x266   :  { %435 = vsyncpa [#allocation3 + $0x1], 1 }
 0x267   :  { %436 = vsyncpa [#allocation5], 1 }
 0x268   :  { %438 = vsyncpa [#allocation5 + $0x1], 1 }

</bundles_post_ra>
